<compile_context>
chip_gen: v5e
topology: v5e:2x2
jax: 0.10.0
libtpu: 0.0.40
codegen_flags: <defaults>
</compile_context>

<pallas_src>
import functools

import jax
import jax.numpy as jnp
from jax.experimental import pallas as pl
from jax.experimental.pallas import tpu as pltpu


def _chip_config():
    """Returns (tensorcores_per_chip, vmem_limit_bytes, per_input_dma_tile_bytes)."""
    try:
        kind = jax.devices()[0].device_kind.lower()
    except Exception:
        kind = ""
    if "v7" in kind or "7x" in kind:
        # v7x: 2 TCs/chip, 64 MiB VMEM per TC -> smaller tiles, limit well under physical.
        return 2, 48 * 1024 * 1024, 4 * 1024 * 1024
    # v5e / v6e (and unknown chips, conservatively): 1 TC, 128 MiB VMEM.
    return 1, 64 * 1024 * 1024, 8 * 1024 * 1024


def _joints_mse_kernel(pred_ref, gt_ref, out_ref, *, tm, rc, hw, inner,
                       n_blocks, n_rows, needs_mask, has_overshoot):
    c = pl.program_id(0)            # partial / TensorCore-split axis ("parallel")
    t = pl.program_id(1)            # row-tile reduction axis ("arbitrary")
    gb = c * inner + t              # nominal global block index (may overshoot by 1)
    last = n_blocks - 1

    @pl.when(t == 0)
    def _():
        out_ref[...] = jnp.zeros_like(out_ref)

    trip = tm // rc                 # static row-chunk count inside one DMA tile
    unroll = trip <= 8

    def accumulate(mask_rows):
        row0 = last * tm            # masking only ever applies to the last real block

        def chunk(i, carry):
            r0 = pl.multiple_of(i * rc, 8)
            # In-kernel upcast: DMA bytes stay at input dtype, math is f32, and only
            # an rc-row strip of f32 temporaries is live at a time.
            p = pred_ref[pl.ds(r0, rc), :].astype(jnp.float32)   # (rc, HW)
            g = gt_ref[pl.ds(r0, rc), :].astype(jnp.float32)     # (rc, HW)
            # target_weight per (batch, joint) row: (max over spatial dim > 0).float()
            tw = (jnp.max(g, axis=-1, keepdims=True) > 0.0).astype(jnp.float32)
            diff = p * tw - g
            if mask_rows:
                # Rows past the real row count hold stale VMEM data -> select to 0.
                local = jax.lax.broadcasted_iota(jnp.int32, (rc, 1), 0)
                valid = (row0 + r0 + local) < n_rows
                diff = jnp.where(valid, diff, 0.0)
            d2 = diff * diff
            # Fold sublane-tile groups only (pure VPU adds, no cross-lane reduce) and
            # accumulate into the vreg-shaped output block.
            out_ref[...] += jnp.sum(d2.reshape(rc // 8, 8, hw), axis=0)
            return carry

        jax.lax.fori_loop(0, trip, chunk, 0, unroll=unroll)

    if needs_mask:
        @pl.when(gb == last)        # the single padded edge block pays for masking
        def _():
            accumulate(True)

        @pl.when(gb < last)         # steady-state path: no masking work at all
        def _():
            accumulate(False)
    elif has_overshoot:
        @pl.when(gb <= last)        # skip the clamped duplicate block entirely
        def _():
            accumulate(False)
    else:
        accumulate(False)


def joints_mse_loss(output, target, *, max_rows_per_tile=None, force_partials=None):
    """output, target: (B, J, H, W) -> scalar float32 JointsMSELoss."""
    B, J, H, W = output.shape
    HW = H * W
    R = B * J

    # Free reshapes (no transpose, no HBM rewrite): one row per (batch, joint).
    pred = output.reshape(R, HW)
    gt = target.reshape(R, HW)

    num_tc, vmem_limit, tile_target = _chip_config()
    in_bytes = pred.dtype.itemsize + gt.dtype.itemsize   # bytes/elem across both inputs

    def rup(x, m):
        return -(-x // m) * m

    def rdn(x, m):
        return (x // m) * m

    rows8 = rup(R, 8)

    # Compute-chunk rows: keep the in-kernel f32 working set at ~1 MiB per temp array.
    rc = max(8, min(rows8, rdn((1 << 20) // (HW * 4), 8)))

    # DMA-tile rows: dtype-aware, per-generation target per input, multiple of rc.
    tm_cap = max(8, rdn((2 * tile_target) // (HW * in_bytes), 8))
    if max_rows_per_tile is not None:       # test hook: force multi-tile / masked paths
        tm_cap = min(tm_cap, max(8, rdn(max_rows_per_tile, 8)))
    rc = min(rc, tm_cap)
    tm_cap = max(rc, rdn(tm_cap, rc))
    tm_cap = min(tm_cap, rup(rows8, rc))

    n_blocks = -(-rows8 // tm_cap)
    num_partials = num_tc if (num_tc > 1 and n_blocks >= num_tc) else 1
    if force_partials is not None:          # test hook: exercise the 2-core split path
        num_partials = max(1, min(int(force_partials), n_blocks))

    # Rebalance: round the block count up to a multiple of num_partials and even out
    # the rows per block (avoids a mostly-empty last block and, when it works out,
    # the clamped duplicate-tile DMA on the 2-core split).
    n_blocks = rup(n_blocks, num_partials)
    tm = max(rc, min(tm_cap, rup(-(-rows8 // n_blocks), rc)))
    n_blocks = -(-rows8 // tm)
    inner = -(-n_blocks // num_partials)

    needs_mask = n_blocks * tm > R
    has_overshoot = num_partials * inner > n_blocks

    def in_block(c, t):
        # Clamp: if a partial overshoots by one block, it re-reads the last block;
        # its contribution is skipped in-kernel.
        return (jnp.minimum(c * inner + t, n_blocks - 1), 0)

    kernel = functools.partial(
        _joints_mse_kernel, tm=tm, rc=rc, hw=HW, inner=inner, n_blocks=n_blocks,
        n_rows=R, needs_mask=needs_mask, has_overshoot=has_overshoot)

    partials = pl.pallas_call(
        kernel,
        out_shape=jax.ShapeDtypeStruct((num_partials * 8, HW), jnp.float32),
        grid_spec=pltpu.PrefetchScalarGridSpec(
            num_scalar_prefetch=0,
            grid=(num_partials, inner),
            in_specs=[
                pl.BlockSpec((tm, HW), in_block),
                pl.BlockSpec((tm, HW), in_block),
            ],
            out_specs=pl.BlockSpec((8, HW), lambda c, t: (c, 0)),
        ),
        compiler_params=pltpu.CompilerParams(
            dimension_semantics=("parallel", "arbitrary"),
            vmem_limit_bytes=vmem_limit,
        ),
        cost_estimate=pl.CostEstimate(
            flops=7 * R * HW,
            transcendentals=0,
            bytes_accessed=R * HW * in_bytes + num_partials * 8 * HW * 4,
        ),
    )(pred, gt)

    scale = jnp.float32(0.5 / (J * B * HW))
    return jnp.sum(partials) * scale


def joints_mse_loss_ref(output, target):
    """Pure-JAX reference mirroring the PyTorch loop, for validation."""
    B, J, H, W = output.shape
    pred = output.reshape(B, J, -1).astype(jnp.float32)
    gt = target.reshape(B, J, -1).astype(jnp.float32)
    loss = 0.0
    for idx in range(J):
        p = pred[:, idx, :]
        g = gt[:, idx, :]
        tw = (jnp.max(g, axis=1) > 0).astype(jnp.float32).reshape(-1, 1)
        loss = loss + 0.5 * jnp.mean((p * tw - g) ** 2)
    return loss / J


if __name__ == "__main__":
    key = jax.random.PRNGKey(0)

    # Test 1: base case (single tile, single partial, no masking).
    k1, k2 = jax.random.split(key)
    B, J, H, W = 2, 4, 16, 16
    output = jax.random.normal(k1, (B, J, H, W), dtype=jnp.float32)
    target = jax.random.normal(k2, (B, J, H, W), dtype=jnp.float32)
    # Make one joint's gt entirely non-positive so the target_weight=0 branch runs.
    target = target.at[:, 1].set(-jnp.abs(target[:, 1]))
    loss = jax.block_until_ready(joints_mse_loss(output, target))
    ref = jax.block_until_ready(joints_mse_loss_ref(output, target))
    assert jnp.allclose(loss, ref, rtol=1e-5, atol=1e-6), (loss, ref)

    # Test 2: multi-tile + padded final block (R=15 rows, 8-row tiles).
    k3, k4 = jax.random.split(k1)
    o2 = jax.random.normal(k3, (3, 5, 16, 16), dtype=jnp.float32)
    t2 = jax.random.normal(k4, (3, 5, 16, 16), dtype=jnp.float32)
    t2 = t2.at[:, 2].set(-jnp.abs(t2[:, 2]))
    l2 = jax.block_until_ready(joints_mse_loss(o2, t2, max_rows_per_tile=8))
    r2 = jax.block_until_ready(joints_mse_loss_ref(o2, t2))
    assert jnp.allclose(l2, r2, rtol=1e-5, atol=1e-6), (l2, r2)

    # Test 3: odd block count + forced 2-partial split -> exercises the clamped
    # duplicate-tile skip and the masked final block together (runs on any chip).
    k5, k6 = jax.random.split(k2)
    o3 = jax.random.normal(k5, (2, 9, 16, 16), dtype=jnp.float32)
    t3 = jax.random.normal(k6, (2, 9, 16, 16), dtype=jnp.float32)
    l3 = jax.block_until_ready(
        joints_mse_loss(o3, t3, max_rows_per_tile=8, force_partials=2))
    r3 = jax.block_until_ready(joints_mse_loss_ref(o3, t3))
    assert jnp.allclose(l3, r3, rtol=1e-5, atol=1e-6), (l3, r3)

    # Test 4: bf16 inputs (dtype-aware tile sizing; in-kernel upcast to f32).
    k7, k8 = jax.random.split(k3)
    o4 = jax.random.normal(k7, (B, J, H, W), dtype=jnp.bfloat16)
    t4 = jax.random.normal(k8, (B, J, H, W), dtype=jnp.bfloat16)
    t4 = t4.at[:, 3].set(-jnp.abs(t4[:, 3]))
    l4 = jax.block_until_ready(joints_mse_loss(o4, t4))
    r4 = jax.block_until_ready(joints_mse_loss_ref(o4, t4))
    assert jnp.allclose(l4, r4, rtol=1e-5, atol=1e-6), (l4, r4)

    print("KERNEL_OK")
</pallas_src>

<mosaic_0001>
module attributes {stable_mosaic.version = 11 : i64} {
  func.func @_joints_mse_kernel(%arg0: i32, %arg1: i32, %arg2: memref<8x256xf32, #tpu.memory_space<vmem>>, %arg3: memref<8x256xf32, #tpu.memory_space<vmem>>, %arg4: memref<8x256xf32, #tpu.memory_space<vmem>>) attributes {dimension_semantics = [#tpu.dimension_semantics<parallel>, #tpu.dimension_semantics<arbitrary>], iteration_bounds = array<i64: 1, 1>, scalar_prefetch = 0 : i64, scratch_operands = 0 : i64, tpu.core_type = #tpu.core_type<tc>, window_params = [{transform_indices = @transform_0, window_bounds = array<i64: 8, 256>}, {transform_indices = @transform_1, window_bounds = array<i64: 8, 256>}, {transform_indices = @transform_2, window_bounds = array<i64: 8, 256>}]} {
    %c0_i32 = arith.constant 0 : i32
    %0 = arith.cmpi eq, %arg1, %c0_i32 : i32
    %1 = arith.extui %0 : i1 to i32
    %c0_i32_0 = arith.constant 0 : i32
    %2 = arith.cmpi ne, %1, %c0_i32_0 : i32
    scf.if %2 {
      %cst_9 = arith.constant 0.000000e+00 : f32
      %24 = vector.broadcast %cst_9 : f32 to vector<8x256xf32>
      %c0_10 = arith.constant 0 : index
      %c0_11 = arith.constant 0 : index
      %25 = vector.load %arg4[%c0_10, %c0_11] : memref<8x256xf32, #tpu.memory_space<vmem>>, vector<8x256xf32>
      tpu.vector_store %arg4[%c0_10, %c0_11], %24 {strides = array<i32>} : memref<8x256xf32, #tpu.memory_space<vmem>>, vector<8x256xf32>,
    } else {
    }
    %c0_i32_1 = arith.constant 0 : i32
    %c8_i32 = arith.constant 8 : i32
    %3 = arith.muli %c0_i32_1, %c8_i32 : i32
    %4 = tpu.assume_multiple %3, 8 : i32
    %5 = arith.index_cast %4 : i32 to index
    %c0 = arith.constant 0 : index
    %6 = vector.load %arg2[%5, %c0] : memref<8x256xf32, #tpu.memory_space<vmem>>, vector<8x256xf32>
    %7 = arith.index_cast %4 : i32 to index
    %c0_2 = arith.constant 0 : index
    %8 = vector.load %arg3[%7, %c0_2] : memref<8x256xf32, #tpu.memory_space<vmem>>, vector<8x256xf32>
    %cst = arith.constant dense<0xFF800000> : vector<8xf32>
    %9 = vector.multi_reduction <maximumf>, %8, %cst [1] : vector<8x256xf32> to vector<8xf32>
    %10 = vector.shape_cast %9 : vector<8xf32> to vector<8x1xf32>
    %cst_3 = arith.constant 0.000000e+00 : f32
    %11 = vector.broadcast %cst_3 : f32 to vector<8x1xf32>
    %12 = arith.cmpf ogt, %10, %11 : vector<8x1xf32>
    %13 = arith.extui %12 : vector<8x1xi1> to vector<8x1xi32>
    %14 = arith.sitofp %13 : vector<8x1xi32> to vector<8x1xf32>
    %15 = vector.broadcast %14 : vector<8x1xf32> to vector<8x256xf32>
    %16 = arith.mulf %6, %15 : vector<8x256xf32>
    %17 = arith.subf %16, %8 : vector<8x256xf32>
    %18 = arith.mulf %17, %17 : vector<8x256xf32>
    %c0_4 = arith.constant 0 : index
    %c0_5 = arith.constant 0 : index
    %19 = vector.load %arg4[%c0_4, %c0_5] : memref<8x256xf32, #tpu.memory_space<vmem>>, vector<8x256xf32>
    %20 = vector.shape_cast %18 : vector<8x256xf32> to vector<1x8x256xf32>
    %cst_6 = arith.constant dense<0.000000e+00> : vector<8x256xf32>
    %21 = vector.multi_reduction <add>, %20, %cst_6 [0] : vector<1x8x256xf32> to vector<8x256xf32>
    %22 = arith.addf %19, %21 : vector<8x256xf32>
    %c0_7 = arith.constant 0 : index
    %c0_8 = arith.constant 0 : index
    %23 = vector.load %arg4[%c0_7, %c0_8] : memref<8x256xf32, #tpu.memory_space<vmem>>, vector<8x256xf32>
    tpu.vector_store %arg4[%c0_7, %c0_8], %22 {strides = array<i32>} : memref<8x256xf32, #tpu.memory_space<vmem>>, vector<8x256xf32>,
    %c1_i32 = arith.constant 1 : i32
    return
  }
  func.func @transform_0(%arg0: i32, %arg1: i32) -> (i32, i32) {
    %c1_i32 = arith.constant 1 : i32
    %0 = arith.muli %arg0, %c1_i32 : i32
    %1 = arith.addi %0, %arg1 : i32
    %c0_i32 = arith.constant 0 : i32
    %2 = arith.minsi %1, %c0_i32 : i32
    %c0_i32_0 = arith.constant 0 : i32
    %c0_i32_1 = arith.constant 0 : i32
    return %2, %c0_i32_0 : i32, i32
  }
  func.func @transform_1(%arg0: i32, %arg1: i32) -> (i32, i32) {
    %c1_i32 = arith.constant 1 : i32
    %0 = arith.muli %arg0, %c1_i32 : i32
    %1 = arith.addi %0, %arg1 : i32
    %c0_i32 = arith.constant 0 : i32
    %2 = arith.minsi %1, %c0_i32 : i32
    %c0_i32_0 = arith.constant 0 : i32
    %c0_i32_1 = arith.constant 0 : i32
    return %2, %c0_i32_0 : i32, i32
  }
  func.func @transform_2(%arg0: i32, %arg1: i32) -> (i32, i32) {
    %c0_i32 = arith.constant 0 : i32
    %c0_i32_0 = arith.constant 0 : i32
    return %arg0, %c0_i32 : i32, i32
  }
}

</mosaic_0001>

<bundles_post_ra>
// kernel: tpu_custom_call.1
= control target key start
LH: loop header
LB: loop body
LE: loop exit
PB: predicated region body
PF: predicated region fallthrough
CT: control target
= control target key end

     0   :  { %7 = vsyncpa [#allocation3], 0  ;;  %s226_s0 = inlined_call_operand.hbm [shape: f32[8,256], index: 0, kind: input, shape index: {}]   ;;  %s227_s1 = inlined_call_operand.hbm [shape: f32[8,256], index: 1, kind: input, shape index: {}]   ;;  %s228_s2 = inlined_call_operand.hbm [shape: f32[8,256], index: 2, kind: output, shape index: {}]  }
   0x1   :  { %8 = vsyncpa [#allocation6], 0 }
   0x2   :  { %9 = vsyncpa [#allocation4], 0  ;;  %s21_s11 = sshll.u32 %s226_s0, 4  ;;  %s198_s12 = smov [#allocation2]   ;;  %s22_s11 = int_to_ptr.hbm [resolvable:$true] %s21_s11 }
   0x3   :  { %s23_s13 = sshll.u32 %s198_s12, 4  ;;  %s38_s16 = sshll.u32 %s227_s1, 4  ;;  %s24_s13 = int_to_ptr.vmem [resolvable:$true] %s23_s13  ;;  %s39_s16 = int_to_ptr.hbm [resolvable:$true] %s38_s16 }
   0x4   :  { %26 = dma.hbm_to_vmem [thread:$0]  %s22_s11, 256, %s24_s13, [#allocation3]  }
   0x5   :  { %s199_s17 = smov [#allocation5]  }
   0x6   :  { %s40_s18 = sshll.u32 %s199_s17, 4  ;;  %s41_s18 = int_to_ptr.vmem [resolvable:$true] %s40_s18 }
   0x7   :  { %43 = dma.hbm_to_vmem [thread:$0]  %s39_s16, 256, %s41_s18, [#allocation6]  }
   0x8   :  { %192 = dma.done.wait [#allocation3], 256  }
   0x9   :  { %193 = vsyncadd [#allocation3], 4294967040 }
   0xa   :  { %194 = dma.done.wait [#allocation6], 256  }
   0xb   :  { %195 = vsyncadd [#allocation6], 4294967040  ;;  %v71_v0 = vld [vmem:[#allocation5] sm:$0xff]  ;;  %v72_v1 = vld [vmem:[#allocation5 + $0x8] sm:$0xff]  ;;  %v200_v6 = vmov 0.0   ;;  %s201_s0 = smov [#allocation7]  }
   0xc   :  { %v73_v2 = vmax.f32 %v71_v0, %v72_v1  ;;  %v67_v3 = vld [vmem:[#allocation2] sm:$0xff]  ;;  %v68_v4 = vld [vmem:[#allocation2 + $0x8] sm:$0xff]  ;;  %s98_s1 = sshll.u32 %s201_s0, 4  ;;  %s100_s21 = sshll.u32 %s228_s2, 4  ;;  %s99_s1 = int_to_ptr.vmem [resolvable:$true] %s98_s1  ;;  %s101_s21 = int_to_ptr.hbm [resolvable:$true] %s100_s21 }
   0xe   :  { %74 = vmax.xlane.f32.xlu0 %v73_v2 }
  0x81   :  { %v75_v5 = vpop.xlane.xlu0 %74 }
  0x82   :  { %vm76_vm0 = vcmp.gt.f32.partialorder %v75_v5, 0.0 }
  0x83   :  { %v115_v7 = vsel %vm76_vm0, 1.0, %v200_v6 }
  0x84   :  { %v79_v8 = vmul.f32 %v115_v7, %v67_v3  ;;  %v80_v9 = vmul.f32 %v115_v7, %v68_v4 }
  0x86   :  { %v81_v10 = vsub.f32 %v79_v8, %v71_v0  ;;  %v82_v11 = vsub.f32 %v80_v9, %v72_v1 }
  0x88   :  { %v83_v12 = vmul.f32 %v81_v10, %v81_v10  ;;  %v84_v13 = vmul.f32 %v82_v11, %v82_v11 }
  0x8a   :  { %91 = vst [vmem:[#allocation7] sm:$0xff] %v83_v12 }
  0x8b   :  { %92 = vst [vmem:[#allocation7 + $0x8] sm:$0xff] %v84_v13 }
  0x8c   :  { %103 = dma.vmem_to_hbm [thread:$0]  %s99_s1, 256, %s101_s21, [#allocation4]  }
  0x8d   :  { %196 = dma.done.wait [#allocation4], 256  }
  0x8e   :  { %197 = vsyncadd [#allocation4], 4294967040 }
  0x8f   :  { %108 = vsyncpa [#allocation3], 1 }
  0x90   :  { %109 = vsyncpa [#allocation6], 1 }
  0x91   :  { %110 = vsyncpa [#allocation4], 1 }

</bundles_post_ra>
